<compile_context>
chip_gen: v6e
topology: v6e:2x2x1
jax: 0.10.0
libtpu: 0.0.40
codegen_flags: <defaults>
</compile_context>

<pallas_src>
import functools
import math

import jax
import jax.numpy as jnp
from jax.experimental import pallas as pl
from jax.experimental.pallas import tpu as pltpu


def _nsmha_kernel(x_ref, w_ref, b_ref, g_ref, beta_ref, o_ref, v_ref, *,
                  num_heads, head_dim, seq_len, eps):
    # x_ref:  (1, S, E)          w_ref: (4, E, E)  [q, k, v, proj], stored (in, out)
    # b_ref:  (4, 1, E)          g_ref / beta_ref: (4, 1, E)  LayerNorm affine
    # o_ref:  (1, S, E)          v_ref: (1, H, S, d)
    embed = num_heads * head_dim
    scale = 1.0 / math.sqrt(head_dim)

    x = x_ref[0]                                    # (S, E), input dtype

    def linear(i):
        # operands in input dtype (bf16-friendly), f32 accumulation
        y = jnp.dot(x, w_ref[i], preferred_element_type=jnp.float32)
        return y + b_ref[i].astype(jnp.float32)

    def layer_norm(y, i):
        mu = jnp.mean(y, axis=-1, keepdims=True)
        var = jnp.mean(jnp.square(y - mu), axis=-1, keepdims=True)
        y = (y - mu) * jax.lax.rsqrt(var + eps)
        return y * g_ref[i].astype(jnp.float32) + beta_ref[i].astype(jnp.float32)

    q = layer_norm(linear(0), 0)                    # (S, E) f32
    k = layer_norm(linear(1), 1)
    v = layer_norm(linear(2), 2)

    row = jax.lax.broadcasted_iota(jnp.int32, (seq_len, seq_len), 0)
    col = jax.lax.broadcasted_iota(jnp.int32, (seq_len, seq_len), 1)
    causal = row >= col
    neg = jnp.float32(-1e30)

    w_proj = w_ref[3]                               # (E, E)
    proj_in = jnp.zeros((seq_len, embed), jnp.float32)

    for h in range(num_heads):                      # static unroll over heads
        lo = h * head_dim
        q_h = q[:, lo:lo + head_dim]                # (S, d)
        k_h = k[:, lo:lo + head_dim]
        v_h = v[:, lo:lo + head_dim]

        # scores = q_h @ k_h.T  (contract on d, no explicit transpose)
        att = jax.lax.dot_general(
            q_h, k_h, (((1,), (1,)), ((), ())),
            preferred_element_type=jnp.float32) * scale         # (S, S)
        att = jnp.where(causal, att, neg)
        att = att - jnp.max(att, axis=-1, keepdims=True)
        p = jnp.exp(att)
        p = p / jnp.sum(p, axis=-1, keepdims=True)

        o_h = jnp.dot(p, v_h, preferred_element_type=jnp.float32)   # (S, d)
        # accumulate this head's contribution to the output projection
        proj_in = proj_in + jnp.dot(
            o_h, w_proj[lo:lo + head_dim, :],
            preferred_element_type=jnp.float32)

        v_ref[0, h, :, :] = v_h.astype(v_ref.dtype)

    out = layer_norm(proj_in + b_ref[3].astype(jnp.float32), 3)
    o_ref[0] = out.astype(o_ref.dtype)


def nsmha_forward(x, w, b, g, beta, *, num_heads=2, eps=1e-5):
    """x: (B, S, E) -> (attention (B, S, E), value (B, H, S, E // H))."""
    B, S, E = x.shape
    assert E % num_heads == 0, "embed_dim must be divisible by num_heads"
    d = E // num_heads

    kernel = functools.partial(
        _nsmha_kernel, num_heads=num_heads, head_dim=d, seq_len=S, eps=eps)

    # Advisory cost estimate so XLA can overlap neighbouring ops.
    flops = int(B * (10 * S * E * E + 4 * S * S * E))
    transcendentals = int(B * num_heads * S * S + 8 * B * S)
    bytes_accessed = int(4 * (x.size + w.size + b.size + g.size + beta.size
                              + B * S * E + B * num_heads * S * d))

    return pl.pallas_call(
        kernel,
        out_shape=(
            jax.ShapeDtypeStruct((B, S, E), x.dtype),
            jax.ShapeDtypeStruct((B, num_heads, S, d), x.dtype),
        ),
        grid_spec=pltpu.PrefetchScalarGridSpec(
            num_scalar_prefetch=0,
            grid=(B,),
            in_specs=[
                pl.BlockSpec((1, S, E), lambda i: (i, 0, 0)),    # x (per batch)
                pl.BlockSpec((4, E, E), lambda i: (0, 0, 0)),    # weights (resident)
                pl.BlockSpec((4, 1, E), lambda i: (0, 0, 0)),    # linear biases
                pl.BlockSpec((4, 1, E), lambda i: (0, 0, 0)),    # LN gamma
                pl.BlockSpec((4, 1, E), lambda i: (0, 0, 0)),    # LN beta
            ],
            out_specs=(
                pl.BlockSpec((1, S, E), lambda i: (i, 0, 0)),
                pl.BlockSpec((1, num_heads, S, d), lambda i: (i, 0, 0, 0)),
            ),
        ),
        compiler_params=pltpu.CompilerParams(
            dimension_semantics=("parallel",)),
        cost_estimate=pl.CostEstimate(
            flops=flops, transcendentals=transcendentals,
            bytes_accessed=bytes_accessed),
    )(x, w, b, g, beta)


def _init_params(key, embed_dim):
    """nn.Linear-style U(-1/sqrt(E), 1/sqrt(E)) weights; non-trivial LN affine."""
    ks = jax.random.split(key, 10)
    bound = 1.0 / math.sqrt(embed_dim)

    def lin(kw, kb):
        wi = jax.random.uniform(kw, (embed_dim, embed_dim), jnp.float32, -bound, bound)
        bi = jax.random.uniform(kb, (embed_dim,), jnp.float32, -bound, bound)
        return wi, bi

    wq, bq = lin(ks[0], ks[1])
    wk, bk = lin(ks[2], ks[3])
    wv, bv = lin(ks[4], ks[5])
    wp, bp = lin(ks[6], ks[7])
    gamma = 1.0 + 0.1 * jax.random.normal(ks[8], (4, embed_dim), jnp.float32)
    beta = 0.1 * jax.random.normal(ks[9], (4, embed_dim), jnp.float32)

    w = jnp.stack([wq, wk, wv, wp], axis=0)                 # (4, E, E)
    b = jnp.stack([bq, bk, bv, bp], axis=0)[:, None, :]     # (4, 1, E)
    return w, b, gamma[:, None, :], beta[:, None, :]


def _reference(x, w, b, g, beta, num_heads, eps=1e-5):
    B, S, E = x.shape
    d = E // num_heads
    x32 = x.astype(jnp.float32)

    def layer_norm(y, i):
        mu = jnp.mean(y, axis=-1, keepdims=True)
        var = jnp.mean(jnp.square(y - mu), axis=-1, keepdims=True)
        y = (y - mu) * jax.lax.rsqrt(var + eps)
        return y * g[i] + beta[i]

    q = layer_norm(x32 @ w[0] + b[0], 0)
    k = layer_norm(x32 @ w[1] + b[1], 1)
    v = layer_norm(x32 @ w[2] + b[2], 2)

    def heads(t):
        return t.reshape(B, S, num_heads, d).transpose(0, 2, 1, 3)

    qh, kh, vh = heads(q), heads(k), heads(v)
    att = jnp.einsum('bhsd,bhtd->bhst', qh, kh) * (1.0 / math.sqrt(d))
    mask = jnp.tril(jnp.ones((S, S), bool))
    att = jnp.where(mask, att, jnp.float32(-1e30))
    att = att - att.max(-1, keepdims=True)
    p = jnp.exp(att)
    p = p / p.sum(-1, keepdims=True)
    o = jnp.einsum('bhst,bhtd->bhsd', p, vh)
    o = o.transpose(0, 2, 1, 3).reshape(B, S, E)
    out = layer_norm(o @ w[3] + b[3], 3)
    return out.astype(x.dtype), vh.astype(x.dtype)


if __name__ == "__main__":
    key = jax.random.PRNGKey(0)
    kx, kp = jax.random.split(key)

    B, S, E, H = 2, 8, 32, 2          # embed_dim=32, num_heads=2 -> head_dim=16
    x = jax.random.normal(kx, (B, S, E), jnp.float32)
    w, b, g, beta = _init_params(kp, E)

    attn, value = nsmha_forward(x, w, b, g, beta, num_heads=H)
    attn = jax.block_until_ready(attn)
    value = jax.block_until_ready(value)

    ref_attn, ref_value = _reference(x, w, b, g, beta, H)
    assert attn.shape == (B, S, E)
    assert value.shape == (B, H, S, E // H)
    assert jnp.allclose(attn, ref_attn, atol=1e-4, rtol=1e-4)
    assert jnp.allclose(value, ref_value, atol=1e-4, rtol=1e-4)

    print("KERNEL_OK")
</pallas_src>

<mosaic_0001>
module attributes {stable_mosaic.version = 11 : i64} {
  func.func @_nsmha_kernel(%arg0: i32, %arg1: memref<1x8x32xf32, #tpu.memory_space<vmem>>, %arg2: memref<4x32x32xf32, #tpu.memory_space<vmem>>, %arg3: memref<4x1x32xf32, #tpu.memory_space<vmem>>, %arg4: memref<4x1x32xf32, #tpu.memory_space<vmem>>, %arg5: memref<4x1x32xf32, #tpu.memory_space<vmem>>, %arg6: memref<1x8x32xf32, #tpu.memory_space<vmem>>, %arg7: memref<1x2x8x16xf32, #tpu.memory_space<vmem>>) attributes {dimension_semantics = [#tpu.dimension_semantics<parallel>], iteration_bounds = array<i64: 2>, scalar_prefetch = 0 : i64, scratch_operands = 0 : i64, tpu.core_type = #tpu.core_type<tc>, window_params = [{transform_indices = @transform_0, window_bounds = array<i64: 1, 8, 32>}, {pipeline_mode = #tpu.pipeline_mode<synchronous>, transform_indices = @transform_1, window_bounds = array<i64: 4, 32, 32>}, {pipeline_mode = #tpu.pipeline_mode<synchronous>, transform_indices = @transform_2, window_bounds = array<i64: 4, 1, 32>}, {pipeline_mode = #tpu.pipeline_mode<synchronous>, transform_indices = @transform_3, window_bounds = array<i64: 4, 1, 32>}, {pipeline_mode = #tpu.pipeline_mode<synchronous>, transform_indices = @transform_4, window_bounds = array<i64: 4, 1, 32>}, {transform_indices = @transform_5, window_bounds = array<i64: 1, 8, 32>}, {transform_indices = @transform_6, window_bounds = array<i64: 1, 2, 8, 16>}]} {
    %c0 = arith.constant 0 : index
    %c0_0 = arith.constant 0 : index
    %c0_1 = arith.constant 0 : index
    %0 = vector.load %arg1[%c0, %c0_0, %c0_1] : memref<1x8x32xf32, #tpu.memory_space<vmem>>, vector<1x8x32xf32>
    %1 = vector.shape_cast %0 : vector<1x8x32xf32> to vector<8x32xf32>
    %c0_2 = arith.constant 0 : index
    %c0_3 = arith.constant 0 : index
    %c0_4 = arith.constant 0 : index
    %2 = vector.load %arg2[%c0_2, %c0_3, %c0_4] : memref<4x32x32xf32, #tpu.memory_space<vmem>>, vector<1x32x32xf32>
    %3 = vector.shape_cast %2 : vector<1x32x32xf32> to vector<32x32xf32>
    %cst = arith.constant dense<0.000000e+00> : vector<8x32xf32>
    %4 = tpu.matmul %1, %3, %cst {dimension_numbers = #tpu.dot_dimension_numbers<[1], [0], [0], [1], [0, 0, 1, 1], [], []>} : vector<8x32xf32>, vector<32x32xf32>, vector<8x32xf32> -> vector<8x32xf32>
    %c0_5 = arith.constant 0 : index
    %c0_6 = arith.constant 0 : index
    %c0_7 = arith.constant 0 : index
    %5 = vector.load %arg3[%c0_5, %c0_6, %c0_7] : memref<4x1x32xf32, #tpu.memory_space<vmem>>, vector<1x1x32xf32>
    %6 = vector.shape_cast %5 : vector<1x1x32xf32> to vector<1x32xf32>
    %7 = vector.broadcast %6 : vector<1x32xf32> to vector<8x32xf32>
    %8 = arith.addf %4, %7 : vector<8x32xf32>
    %cst_8 = arith.constant dense<0.000000e+00> : vector<8xf32>
    %9 = vector.multi_reduction <add>, %8, %cst_8 [1] : vector<8x32xf32> to vector<8xf32>
    %10 = vector.shape_cast %9 : vector<8xf32> to vector<8x1xf32>
    %cst_9 = arith.constant 3.200000e+01 : f32
    %11 = vector.broadcast %cst_9 : f32 to vector<8x1xf32>
    %12 = arith.divf %10, %11 : vector<8x1xf32>
    %13 = vector.broadcast %12 : vector<8x1xf32> to vector<8x32xf32>
    %14 = arith.subf %8, %13 : vector<8x32xf32>
    %15 = arith.mulf %14, %14 : vector<8x32xf32>
    %cst_10 = arith.constant dense<0.000000e+00> : vector<8xf32>
    %16 = vector.multi_reduction <add>, %15, %cst_10 [1] : vector<8x32xf32> to vector<8xf32>
    %17 = vector.shape_cast %16 : vector<8xf32> to vector<8x1xf32>
    %cst_11 = arith.constant 3.200000e+01 : f32
    %18 = vector.broadcast %cst_11 : f32 to vector<8x1xf32>
    %19 = arith.divf %17, %18 : vector<8x1xf32>
    %20 = vector.broadcast %12 : vector<8x1xf32> to vector<8x32xf32>
    %21 = arith.subf %8, %20 : vector<8x32xf32>
    %cst_12 = arith.constant 9.99999974E-6 : f32
    %22 = vector.broadcast %cst_12 : f32 to vector<8x1xf32>
    %23 = arith.addf %19, %22 : vector<8x1xf32>
    %24 = math.rsqrt %23 : vector<8x1xf32>
    %25 = vector.broadcast %24 : vector<8x1xf32> to vector<8x32xf32>
    %26 = arith.mulf %21, %25 : vector<8x32xf32>
    %c0_13 = arith.constant 0 : index
    %c0_14 = arith.constant 0 : index
    %c0_15 = arith.constant 0 : index
    %27 = vector.load %arg4[%c0_13, %c0_14, %c0_15] : memref<4x1x32xf32, #tpu.memory_space<vmem>>, vector<1x1x32xf32>
    %28 = vector.shape_cast %27 : vector<1x1x32xf32> to vector<1x32xf32>
    %29 = vector.broadcast %28 : vector<1x32xf32> to vector<8x32xf32>
    %30 = arith.mulf %26, %29 : vector<8x32xf32>
    %c0_16 = arith.constant 0 : index
    %c0_17 = arith.constant 0 : index
    %c0_18 = arith.constant 0 : index
    %31 = vector.load %arg5[%c0_16, %c0_17, %c0_18] : memref<4x1x32xf32, #tpu.memory_space<vmem>>, vector<1x1x32xf32>
    %32 = vector.shape_cast %31 : vector<1x1x32xf32> to vector<1x32xf32>
    %33 = vector.broadcast %32 : vector<1x32xf32> to vector<8x32xf32>
    %34 = arith.addf %30, %33 : vector<8x32xf32>
    %c1 = arith.constant 1 : index
    %c0_19 = arith.constant 0 : index
    %c0_20 = arith.constant 0 : index
    %35 = vector.load %arg2[%c1, %c0_19, %c0_20] : memref<4x32x32xf32, #tpu.memory_space<vmem>>, vector<1x32x32xf32>
    %36 = vector.shape_cast %35 : vector<1x32x32xf32> to vector<32x32xf32>
    %cst_21 = arith.constant dense<0.000000e+00> : vector<8x32xf32>
    %37 = tpu.matmul %1, %36, %cst_21 {dimension_numbers = #tpu.dot_dimension_numbers<[1], [0], [0], [1], [0, 0, 1, 1], [], []>} : vector<8x32xf32>, vector<32x32xf32>, vector<8x32xf32> -> vector<8x32xf32>
    %c1_22 = arith.constant 1 : index
    %c0_23 = arith.constant 0 : index
    %c0_24 = arith.constant 0 : index
    %38 = vector.load %arg3[%c1_22, %c0_23, %c0_24] : memref<4x1x32xf32, #tpu.memory_space<vmem>>, vector<1x1x32xf32>
    %39 = vector.shape_cast %38 : vector<1x1x32xf32> to vector<1x32xf32>
    %40 = vector.broadcast %39 : vector<1x32xf32> to vector<8x32xf32>
    %41 = arith.addf %37, %40 : vector<8x32xf32>
    %cst_25 = arith.constant dense<0.000000e+00> : vector<8xf32>
    %42 = vector.multi_reduction <add>, %41, %cst_25 [1] : vector<8x32xf32> to vector<8xf32>
    %43 = vector.shape_cast %42 : vector<8xf32> to vector<8x1xf32>
    %cst_26 = arith.constant 3.200000e+01 : f32
    %44 = vector.broadcast %cst_26 : f32 to vector<8x1xf32>
    %45 = arith.divf %43, %44 : vector<8x1xf32>
    %46 = vector.broadcast %45 : vector<8x1xf32> to vector<8x32xf32>
    %47 = arith.subf %41, %46 : vector<8x32xf32>
    %48 = arith.mulf %47, %47 : vector<8x32xf32>
    %cst_27 = arith.constant dense<0.000000e+00> : vector<8xf32>
    %49 = vector.multi_reduction <add>, %48, %cst_27 [1] : vector<8x32xf32> to vector<8xf32>
    %50 = vector.shape_cast %49 : vector<8xf32> to vector<8x1xf32>
    %cst_28 = arith.constant 3.200000e+01 : f32
    %51 = vector.broadcast %cst_28 : f32 to vector<8x1xf32>
    %52 = arith.divf %50, %51 : vector<8x1xf32>
    %53 = vector.broadcast %45 : vector<8x1xf32> to vector<8x32xf32>
    %54 = arith.subf %41, %53 : vector<8x32xf32>
    %cst_29 = arith.constant 9.99999974E-6 : f32
    %55 = vector.broadcast %cst_29 : f32 to vector<8x1xf32>
    %56 = arith.addf %52, %55 : vector<8x1xf32>
    %57 = math.rsqrt %56 : vector<8x1xf32>
    %58 = vector.broadcast %57 : vector<8x1xf32> to vector<8x32xf32>
    %59 = arith.mulf %54, %58 : vector<8x32xf32>
    %c1_30 = arith.constant 1 : index
    %c0_31 = arith.constant 0 : index
    %c0_32 = arith.constant 0 : index
    %60 = vector.load %arg4[%c1_30, %c0_31, %c0_32] : memref<4x1x32xf32, #tpu.memory_space<vmem>>, vector<1x1x32xf32>
    %61 = vector.shape_cast %60 : vector<1x1x32xf32> to vector<1x32xf32>
    %62 = vector.broadcast %61 : vector<1x32xf32> to vector<8x32xf32>
    %63 = arith.mulf %59, %62 : vector<8x32xf32>
    %c1_33 = arith.constant 1 : index
    %c0_34 = arith.constant 0 : index
    %c0_35 = arith.constant 0 : index
    %64 = vector.load %arg5[%c1_33, %c0_34, %c0_35] : memref<4x1x32xf32, #tpu.memory_space<vmem>>, vector<1x1x32xf32>
    %65 = vector.shape_cast %64 : vector<1x1x32xf32> to vector<1x32xf32>
    %66 = vector.broadcast %65 : vector<1x32xf32> to vector<8x32xf32>
    %67 = arith.addf %63, %66 : vector<8x32xf32>
    %c2 = arith.constant 2 : index
    %c0_36 = arith.constant 0 : index
    %c0_37 = arith.constant 0 : index
    %68 = vector.load %arg2[%c2, %c0_36, %c0_37] : memref<4x32x32xf32, #tpu.memory_space<vmem>>, vector<1x32x32xf32>
    %69 = vector.shape_cast %68 : vector<1x32x32xf32> to vector<32x32xf32>
    %cst_38 = arith.constant dense<0.000000e+00> : vector<8x32xf32>
    %70 = tpu.matmul %1, %69, %cst_38 {dimension_numbers = #tpu.dot_dimension_numbers<[1], [0], [0], [1], [0, 0, 1, 1], [], []>} : vector<8x32xf32>, vector<32x32xf32>, vector<8x32xf32> -> vector<8x32xf32>
    %c2_39 = arith.constant 2 : index
    %c0_40 = arith.constant 0 : index
    %c0_41 = arith.constant 0 : index
    %71 = vector.load %arg3[%c2_39, %c0_40, %c0_41] : memref<4x1x32xf32, #tpu.memory_space<vmem>>, vector<1x1x32xf32>
    %72 = vector.shape_cast %71 : vector<1x1x32xf32> to vector<1x32xf32>
    %73 = vector.broadcast %72 : vector<1x32xf32> to vector<8x32xf32>
    %74 = arith.addf %70, %73 : vector<8x32xf32>
    %cst_42 = arith.constant dense<0.000000e+00> : vector<8xf32>
    %75 = vector.multi_reduction <add>, %74, %cst_42 [1] : vector<8x32xf32> to vector<8xf32>
    %76 = vector.shape_cast %75 : vector<8xf32> to vector<8x1xf32>
    %cst_43 = arith.constant 3.200000e+01 : f32
    %77 = vector.broadcast %cst_43 : f32 to vector<8x1xf32>
    %78 = arith.divf %76, %77 : vector<8x1xf32>
    %79 = vector.broadcast %78 : vector<8x1xf32> to vector<8x32xf32>
    %80 = arith.subf %74, %79 : vector<8x32xf32>
    %81 = arith.mulf %80, %80 : vector<8x32xf32>
    %cst_44 = arith.constant dense<0.000000e+00> : vector<8xf32>
    %82 = vector.multi_reduction <add>, %81, %cst_44 [1] : vector<8x32xf32> to vector<8xf32>
    %83 = vector.shape_cast %82 : vector<8xf32> to vector<8x1xf32>
    %cst_45 = arith.constant 3.200000e+01 : f32
    %84 = vector.broadcast %cst_45 : f32 to vector<8x1xf32>
    %85 = arith.divf %83, %84 : vector<8x1xf32>
    %86 = vector.broadcast %78 : vector<8x1xf32> to vector<8x32xf32>
    %87 = arith.subf %74, %86 : vector<8x32xf32>
    %cst_46 = arith.constant 9.99999974E-6 : f32
    %88 = vector.broadcast %cst_46 : f32 to vector<8x1xf32>
    %89 = arith.addf %85, %88 : vector<8x1xf32>
    %90 = math.rsqrt %89 : vector<8x1xf32>
    %91 = vector.broadcast %90 : vector<8x1xf32> to vector<8x32xf32>
    %92 = arith.mulf %87, %91 : vector<8x32xf32>
    %c2_47 = arith.constant 2 : index
    %c0_48 = arith.constant 0 : index
    %c0_49 = arith.constant 0 : index
    %93 = vector.load %arg4[%c2_47, %c0_48, %c0_49] : memref<4x1x32xf32, #tpu.memory_space<vmem>>, vector<1x1x32xf32>
    %94 = vector.shape_cast %93 : vector<1x1x32xf32> to vector<1x32xf32>
    %95 = vector.broadcast %94 : vector<1x32xf32> to vector<8x32xf32>
    %96 = arith.mulf %92, %95 : vector<8x32xf32>
    %c2_50 = arith.constant 2 : index
    %c0_51 = arith.constant 0 : index
    %c0_52 = arith.constant 0 : index
    %97 = vector.load %arg5[%c2_50, %c0_51, %c0_52] : memref<4x1x32xf32, #tpu.memory_space<vmem>>, vector<1x1x32xf32>
    %98 = vector.shape_cast %97 : vector<1x1x32xf32> to vector<1x32xf32>
    %99 = vector.broadcast %98 : vector<1x32xf32> to vector<8x32xf32>
    %100 = arith.addf %96, %99 : vector<8x32xf32>
    %101 = tpu.iota {dimensions = array<i32: 0>} : vector<8x8xi32>
    %102 = tpu.iota {dimensions = array<i32: 1>} : vector<8x8xi32>
    %103 = arith.cmpi sge, %101, %102 : vector<8x8xi32>
    %c3 = arith.constant 3 : index
    %c0_53 = arith.constant 0 : index
    %c0_54 = arith.constant 0 : index
    %104 = vector.load %arg2[%c3, %c0_53, %c0_54] : memref<4x32x32xf32, #tpu.memory_space<vmem>>, vector<1x32x32xf32>
    %105 = vector.shape_cast %104 : vector<1x32x32xf32> to vector<32x32xf32>
    %cst_55 = arith.constant 0.000000e+00 : f32
    %106 = vector.broadcast %cst_55 : f32 to vector<8x32xf32>
    %107 = vector.extract_strided_slice %34 {offsets = [0, 0], sizes = [8, 16], strides = [1, 1]} : vector<8x32xf32> to vector<8x16xf32>
    %108 = vector.extract_strided_slice %67 {offsets = [0, 0], sizes = [8, 16], strides = [1, 1]} : vector<8x32xf32> to vector<8x16xf32>
    %109 = vector.extract_strided_slice %100 {offsets = [0, 0], sizes = [8, 16], strides = [1, 1]} : vector<8x32xf32> to vector<8x16xf32>
    %cst_56 = arith.constant dense<0.000000e+00> : vector<8x8xf32>
    %110 = tpu.matmul %107, %108, %cst_56 {dimension_numbers = #tpu.dot_dimension_numbers<[1], [1], [0], [0], [0, 0, 1, 0], [], []>} : vector<8x16xf32>, vector<8x16xf32>, vector<8x8xf32> -> vector<8x8xf32>
    %cst_57 = arith.constant 2.500000e-01 : f32
    %111 = vector.broadcast %cst_57 : f32 to vector<8x8xf32>
    %112 = arith.mulf %110, %111 : vector<8x8xf32>
    %cst_58 = arith.constant -1.000000e+30 : f32
    %113 = vector.broadcast %cst_58 : f32 to vector<8x8xf32>
    %114 = arith.select %103, %112, %113 : vector<8x8xi1>, vector<8x8xf32>
    %cst_59 = arith.constant dense<0xFF800000> : vector<8xf32>
    %115 = vector.multi_reduction <maximumf>, %114, %cst_59 [1] : vector<8x8xf32> to vector<8xf32>
    %116 = vector.shape_cast %115 : vector<8xf32> to vector<8x1xf32>
    %117 = vector.broadcast %116 : vector<8x1xf32> to vector<8x8xf32>
    %118 = arith.subf %114, %117 : vector<8x8xf32>
    %119 = math.exp %118 : vector<8x8xf32>
    %cst_60 = arith.constant dense<0.000000e+00> : vector<8xf32>
    %120 = vector.multi_reduction <add>, %119, %cst_60 [1] : vector<8x8xf32> to vector<8xf32>
    %121 = vector.shape_cast %120 : vector<8xf32> to vector<8x1xf32>
    %122 = vector.broadcast %121 : vector<8x1xf32> to vector<8x8xf32>
    %123 = arith.divf %119, %122 : vector<8x8xf32>
    %cst_61 = arith.constant dense<0.000000e+00> : vector<8x16xf32>
    %124 = tpu.matmul %123, %109, %cst_61 {dimension_numbers = #tpu.dot_dimension_numbers<[1], [0], [0], [1], [0, 0, 1, 1], [], []>} : vector<8x8xf32>, vector<8x16xf32>, vector<8x16xf32> -> vector<8x16xf32>
    %125 = vector.extract_strided_slice %105 {offsets = [0, 0], sizes = [16, 32], strides = [1, 1]} : vector<32x32xf32> to vector<16x32xf32>
    %cst_62 = arith.constant dense<0.000000e+00> : vector<8x32xf32>
    %126 = tpu.matmul %124, %125, %cst_62 {dimension_numbers = #tpu.dot_dimension_numbers<[1], [0], [0], [1], [0, 0, 1, 1], [], []>} : vector<8x16xf32>, vector<16x32xf32>, vector<8x32xf32> -> vector<8x32xf32>
    %127 = arith.addf %106, %126 : vector<8x32xf32>
    %c0_63 = arith.constant 0 : index
    %c0_64 = arith.constant 0 : index
    %c0_65 = arith.constant 0 : index
    %c0_66 = arith.constant 0 : index
    %128 = vector.load %arg7[%c0_63, %c0_64, %c0_65, %c0_66] : memref<1x2x8x16xf32, #tpu.memory_space<vmem>>, vector<1x1x8x16xf32>
    %129 = vector.shape_cast %128 : vector<1x1x8x16xf32> to vector<8x16xf32>
    %130 = vector.shape_cast %109 : vector<8x16xf32> to vector<1x1x8x16xf32>
    tpu.vector_store %arg7[%c0_63, %c0_64, %c0_65, %c0_66], %130 {strides = array<i32>} : memref<1x2x8x16xf32, #tpu.memory_space<vmem>>, vector<1x1x8x16xf32>,
    %131 = vector.extract_strided_slice %34 {offsets = [0, 16], sizes = [8, 16], strides = [1, 1]} : vector<8x32xf32> to vector<8x16xf32>
    %132 = vector.extract_strided_slice %67 {offsets = [0, 16], sizes = [8, 16], strides = [1, 1]} : vector<8x32xf32> to vector<8x16xf32>
    %133 = vector.extract_strided_slice %100 {offsets = [0, 16], sizes = [8, 16], strides = [1, 1]} : vector<8x32xf32> to vector<8x16xf32>
    %cst_67 = arith.constant dense<0.000000e+00> : vector<8x8xf32>
    %134 = tpu.matmul %131, %132, %cst_67 {dimension_numbers = #tpu.dot_dimension_numbers<[1], [1], [0], [0], [0, 0, 1, 0], [], []>} : vector<8x16xf32>, vector<8x16xf32>, vector<8x8xf32> -> vector<8x8xf32>
    %cst_68 = arith.constant 2.500000e-01 : f32
    %135 = vector.broadcast %cst_68 : f32 to vector<8x8xf32>
    %136 = arith.mulf %134, %135 : vector<8x8xf32>
    %cst_69 = arith.constant -1.000000e+30 : f32
    %137 = vector.broadcast %cst_69 : f32 to vector<8x8xf32>
    %138 = arith.select %103, %136, %137 : vector<8x8xi1>, vector<8x8xf32>
    %cst_70 = arith.constant dense<0xFF800000> : vector<8xf32>
    %139 = vector.multi_reduction <maximumf>, %138, %cst_70 [1] : vector<8x8xf32> to vector<8xf32>
    %140 = vector.shape_cast %139 : vector<8xf32> to vector<8x1xf32>
    %141 = vector.broadcast %140 : vector<8x1xf32> to vector<8x8xf32>
    %142 = arith.subf %138, %141 : vector<8x8xf32>
    %143 = math.exp %142 : vector<8x8xf32>
    %cst_71 = arith.constant dense<0.000000e+00> : vector<8xf32>
    %144 = vector.multi_reduction <add>, %143, %cst_71 [1] : vector<8x8xf32> to vector<8xf32>
    %145 = vector.shape_cast %144 : vector<8xf32> to vector<8x1xf32>
    %146 = vector.broadcast %145 : vector<8x1xf32> to vector<8x8xf32>
    %147 = arith.divf %143, %146 : vector<8x8xf32>
    %cst_72 = arith.constant dense<0.000000e+00> : vector<8x16xf32>
    %148 = tpu.matmul %147, %133, %cst_72 {dimension_numbers = #tpu.dot_dimension_numbers<[1], [0], [0], [1], [0, 0, 1, 1], [], []>} : vector<8x8xf32>, vector<8x16xf32>, vector<8x16xf32> -> vector<8x16xf32>
    %149 = vector.extract_strided_slice %105 {offsets = [16, 0], sizes = [16, 32], strides = [1, 1]} : vector<32x32xf32> to vector<16x32xf32>
    %cst_73 = arith.constant dense<0.000000e+00> : vector<8x32xf32>
    %150 = tpu.matmul %148, %149, %cst_73 {dimension_numbers = #tpu.dot_dimension_numbers<[1], [0], [0], [1], [0, 0, 1, 1], [], []>} : vector<8x16xf32>, vector<16x32xf32>, vector<8x32xf32> -> vector<8x32xf32>
    %151 = arith.addf %127, %150 : vector<8x32xf32>
    %c0_74 = arith.constant 0 : index
    %c1_75 = arith.constant 1 : index
    %c0_76 = arith.constant 0 : index
    %c0_77 = arith.constant 0 : index
    %152 = vector.load %arg7[%c0_74, %c1_75, %c0_76, %c0_77] : memref<1x2x8x16xf32, #tpu.memory_space<vmem>>, vector<1x1x8x16xf32>
    %153 = vector.shape_cast %152 : vector<1x1x8x16xf32> to vector<8x16xf32>
    %154 = vector.shape_cast %133 : vector<8x16xf32> to vector<1x1x8x16xf32>
    tpu.vector_store %arg7[%c0_74, %c1_75, %c0_76, %c0_77], %154 {strides = array<i32>} : memref<1x2x8x16xf32, #tpu.memory_space<vmem>>, vector<1x1x8x16xf32>,
    %c3_78 = arith.constant 3 : index
    %c0_79 = arith.constant 0 : index
    %c0_80 = arith.constant 0 : index
    %155 = vector.load %arg3[%c3_78, %c0_79, %c0_80] : memref<4x1x32xf32, #tpu.memory_space<vmem>>, vector<1x1x32xf32>
    %156 = vector.shape_cast %155 : vector<1x1x32xf32> to vector<1x32xf32>
    %157 = vector.broadcast %156 : vector<1x32xf32> to vector<8x32xf32>
    %158 = arith.addf %151, %157 : vector<8x32xf32>
    %cst_81 = arith.constant dense<0.000000e+00> : vector<8xf32>
    %159 = vector.multi_reduction <add>, %158, %cst_81 [1] : vector<8x32xf32> to vector<8xf32>
    %160 = vector.shape_cast %159 : vector<8xf32> to vector<8x1xf32>
    %cst_82 = arith.constant 3.200000e+01 : f32
    %161 = vector.broadcast %cst_82 : f32 to vector<8x1xf32>
    %162 = arith.divf %160, %161 : vector<8x1xf32>
    %163 = vector.broadcast %162 : vector<8x1xf32> to vector<8x32xf32>
    %164 = arith.subf %158, %163 : vector<8x32xf32>
    %165 = arith.mulf %164, %164 : vector<8x32xf32>
    %cst_83 = arith.constant dense<0.000000e+00> : vector<8xf32>
    %166 = vector.multi_reduction <add>, %165, %cst_83 [1] : vector<8x32xf32> to vector<8xf32>
    %167 = vector.shape_cast %166 : vector<8xf32> to vector<8x1xf32>
    %cst_84 = arith.constant 3.200000e+01 : f32
    %168 = vector.broadcast %cst_84 : f32 to vector<8x1xf32>
    %169 = arith.divf %167, %168 : vector<8x1xf32>
    %170 = vector.broadcast %162 : vector<8x1xf32> to vector<8x32xf32>
    %171 = arith.subf %158, %170 : vector<8x32xf32>
    %cst_85 = arith.constant 9.99999974E-6 : f32
    %172 = vector.broadcast %cst_85 : f32 to vector<8x1xf32>
    %173 = arith.addf %169, %172 : vector<8x1xf32>
    %174 = math.rsqrt %173 : vector<8x1xf32>
    %175 = vector.broadcast %174 : vector<8x1xf32> to vector<8x32xf32>
    %176 = arith.mulf %171, %175 : vector<8x32xf32>
    %c3_86 = arith.constant 3 : index
    %c0_87 = arith.constant 0 : index
    %c0_88 = arith.constant 0 : index
    %177 = vector.load %arg4[%c3_86, %c0_87, %c0_88] : memref<4x1x32xf32, #tpu.memory_space<vmem>>, vector<1x1x32xf32>
    %178 = vector.shape_cast %177 : vector<1x1x32xf32> to vector<1x32xf32>
    %179 = vector.broadcast %178 : vector<1x32xf32> to vector<8x32xf32>
    %180 = arith.mulf %176, %179 : vector<8x32xf32>
    %c3_89 = arith.constant 3 : index
    %c0_90 = arith.constant 0 : index
    %c0_91 = arith.constant 0 : index
    %181 = vector.load %arg5[%c3_89, %c0_90, %c0_91] : memref<4x1x32xf32, #tpu.memory_space<vmem>>, vector<1x1x32xf32>
    %182 = vector.shape_cast %181 : vector<1x1x32xf32> to vector<1x32xf32>
    %183 = vector.broadcast %182 : vector<1x32xf32> to vector<8x32xf32>
    %184 = arith.addf %180, %183 : vector<8x32xf32>
    %c0_92 = arith.constant 0 : index
    %c0_93 = arith.constant 0 : index
    %c0_94 = arith.constant 0 : index
    %185 = vector.load %arg6[%c0_92, %c0_93, %c0_94] : memref<1x8x32xf32, #tpu.memory_space<vmem>>, vector<1x8x32xf32>
    %186 = vector.shape_cast %185 : vector<1x8x32xf32> to vector<8x32xf32>
    %187 = vector.shape_cast %184 : vector<8x32xf32> to vector<1x8x32xf32>
    tpu.vector_store %arg6[%c0_92, %c0_93, %c0_94], %187 {strides = array<i32>} : memref<1x8x32xf32, #tpu.memory_space<vmem>>, vector<1x8x32xf32>,
    return
  }
  func.func @transform_0(%arg0: i32) -> (i32, i32, i32) {
    %c0_i32 = arith.constant 0 : i32
    %c0_i32_0 = arith.constant 0 : i32
    %c0_i32_1 = arith.constant 0 : i32
    return %arg0, %c0_i32, %c0_i32_0 : i32, i32, i32
  }
  func.func @transform_1(%arg0: i32) -> (i32, i32, i32) {
    %c0_i32 = arith.constant 0 : i32
    %c0_i32_0 = arith.constant 0 : i32
    %c0_i32_1 = arith.constant 0 : i32
    %c0_i32_2 = arith.constant 0 : i32
    return %c0_i32, %c0_i32_0, %c0_i32_1 : i32, i32, i32
  }
  func.func @transform_2(%arg0: i32) -> (i32, i32, i32) {
    %c0_i32 = arith.constant 0 : i32
    %c0_i32_0 = arith.constant 0 : i32
    %c0_i32_1 = arith.constant 0 : i32
    %c0_i32_2 = arith.constant 0 : i32
    return %c0_i32, %c0_i32_0, %c0_i32_1 : i32, i32, i32
  }
  func.func @transform_3(%arg0: i32) -> (i32, i32, i32) {
    %c0_i32 = arith.constant 0 : i32
    %c0_i32_0 = arith.constant 0 : i32
    %c0_i32_1 = arith.constant 0 : i32
    %c0_i32_2 = arith.constant 0 : i32
    return %c0_i32, %c0_i32_0, %c0_i32_1 : i32, i32, i32
  }
  func.func @transform_4(%arg0: i32) -> (i32, i32, i32) {
    %c0_i32 = arith.constant 0 : i32
    %c0_i32_0 = arith.constant 0 : i32
    %c0_i32_1 = arith.constant 0 : i32
    %c0_i32_2 = arith.constant 0 : i32
    return %c0_i32, %c0_i32_0, %c0_i32_1 : i32, i32, i32
  }
  func.func @transform_5(%arg0: i32) -> (i32, i32, i32) {
    %c0_i32 = arith.constant 0 : i32
    %c0_i32_0 = arith.constant 0 : i32
    %c0_i32_1 = arith.constant 0 : i32
    return %arg0, %c0_i32, %c0_i32_0 : i32, i32, i32
  }
  func.func @transform_6(%arg0: i32) -> (i32, i32, i32, i32) {
    %c0_i32 = arith.constant 0 : i32
    %c0_i32_0 = arith.constant 0 : i32
    %c0_i32_1 = arith.constant 0 : i32
    %c0_i32_2 = arith.constant 0 : i32
    return %arg0, %c0_i32, %c0_i32_0, %c0_i32_1 : i32, i32, i32, i32
  }
}

</mosaic_0001>

<bundles_post_ra>
// kernel: tpu_custom_call.1
= control target key start
LH: loop header
LB: loop body
LE: loop exit
PB: predicated region body
PF: predicated region fallthrough
CT: control target
= control target key end

     0   :  { %s2177_s0 = inlined_call_operand.hbm [shape: f32[2,8,32], index: 0, kind: input, shape index: {}]   ;;  %s2178_s1 = inlined_call_operand.hbm [shape: f32[4,32,32], index: 1, kind: input, shape index: {}]   ;;  %s2179_s2 = inlined_call_operand.hbm [shape: f32[4,1,32], index: 2, kind: input, shape index: {}]   ;;  %s2180_s3 = inlined_call_operand.vmem [shape: f32[4,1,32], index: 3, kind: input, shape index: {}]   ;;  %s2181_s4 = inlined_call_operand.hbm [shape: f32[4,1,32], index: 4, kind: input, shape index: {}]   ;;  %s2182_s5 = inlined_call_operand.hbm [shape: f32[2,8,32], index: 5, kind: output, shape index: {0}]   ;;  %s2183_s6 = inlined_call_operand.hbm [shape: f32[2,2,8,16], index: 6, kind: output, shape index: {1}]  }
   0x1   :  { %2188 = sst [smem:[#allocation18_spill]] %s2178_s1 }
   0x2   :  { %12 = vsyncpa [#allocation3], 0 }
   0x3   :  { %14 = vsyncpa [#allocation3 + $0x1], 0 }
   0x4   :  { %15 = vsyncpa [#allocation6], 0 }
   0x5   :  { %16 = vsyncpa [#allocation9], 0 }
   0x6   :  { %17 = vsyncpa [#allocation4], 0 }
   0x7   :  { %19 = vsyncpa [#allocation4 + $0x1], 0 }
   0x8   :  { %20 = vsyncpa [#allocation12], 0 }
   0x9   :  { %22 = vsyncpa [#allocation12 + $0x1], 0  ;;  %s1877_s21 = smov 0   ;;  %s1879_s22 = smov 0  }
   0xa   :  { %s1881_s23 = smov 0   ;;  %s1883_s24 = smov 0  }
   0xb LB: > { %s1898_s25 = sadd.s32 4294967295, %s1825_s24   ;;  %s1364_s26 = sadd.s32 4294967294, %s1825_s24   ;;  %s1825_s24 = sphi %s1883_s24, %s2209_s24   ;;  %s1821_s23 = sphi %s1881_s23, %s2208_s23   ;;  %s1817_s22 = sphi %s1879_s22, %s2207_s22   ;;  %s1813_s21 = sphi %s1877_s21, %s2206_s21  }
   0xc   : > { %p48_p0 = scmp.ne.s32.totalorder %s1817_s22, %s1813_s21  ;;  %p2184_p1 = scmp.eq.s32.totalorder %s1898_s25, 0 }
   0xd   : > { %p162_p3 = scmp.eq.s32.totalorder %s1364_s26, 1  ;;  %p1365_p5 = scmp.ge.s32.totalorder %s1825_s24, 1 }
   0xe   : > { %p1907_p4 = por %p2184_p1, %p48_p0  ;;  %p195_p7 = scmp.lt.s32.totalorder %s1825_s24, 3 }
   0xf   : > { %p1912_p6 = por %p162_p3, %p48_p0  ;;  %s1827_s30 = smov [#allocation5]  }
  0x10   : > { %s2189_s27 = scalar_select %p1907_p4, 1, 0 }
  0x11   : > { %s2190_s28 = scalar_select %p1912_p6, 1, 0 }
  0x12   : > { %p1917_p8 = pnand %p1365_p5, %p195_p7  ;;  %s207_s7 = sshll.u32 %s1827_s30, 4  ;;  %s208_s7 = int_to_ptr.vmem [resolvable:$true] %s207_s7 }
  0x13   : > { %s1828_s9 = smov [#allocation7]   ;;  %s1628_s11 = scalar_lea.vmem %s208_s7, 2048 }
  0x14   : > { %s2191_s29 = scalar_select %p1917_p8, 1, 0 }
  0x15   : > { %p1528_p9 = pneg %p1917_p8  ;;  %s220_s10 = sshll.u32 %s1828_s9, 4  ;;  %s221_s10 = int_to_ptr.vmem [resolvable:$true] %s220_s10 }
  0x16   : > { %p1629_p13 = scmp.ne.s32.totalorder %s208_s7, %s1628_s11  ;;  %p1636_p5 = scmp.lt.s32.totalorder %s208_s7, %s208_s7 }
  0x17   : > { %p1926_p11 = pnand %p1528_p9, %p2184_p1  ;;  %p1637_p7 = scmp.lt.s32.totalorder %s1628_s11, %s1628_s11 }
  0x19   : > { %p1619_p12 = pneg %p1926_p11  ;;  %p1638_p10 = por %p1637_p7, %p1636_p5 }
  0x1b   : > { %p1631_p0 = pnand %p1629_p13, %p1619_p12 }
  0x1d   : > { %p1632_p3 = pneg %p1631_p0 }
  0x1f   : > { %p1639_p9 = pnand %p1638_p10, %p1632_p3 }
  0x21   : > { %1642 = shalt.err (!%p1639_p9)
}
  0x22   : > { %s1829_s12 = smov 128   ;;  %s1830_s13 = smov 8  }
  0x23   : > { %s2193_s1 = sld [smem:[#allocation18_spill]]  ;;  %s1654_s16 = scalar_lea.vmem %s221_s10, 64 }
  0x24   : > { %p1655_p1 = scmp.ne.s32.totalorder %s221_s10, %s1654_s16  ;;  %p1662_p2 = scmp.lt.s32.totalorder %s221_s10, %s221_s10 }
  0x25   : > { %p1663_p6 = scmp.lt.s32.totalorder %s1654_s16, %s1654_s16 }
  0x26   : > { %p1657_p13 = pnand %p1655_p1, %p1619_p12 }
  0x27   : > { %p1664_p5 = por %p1663_p6, %p1662_p2 }
  0x28   : > { %p1658_p0 = pneg %p1657_p13 }
  0x29   : > { %1531 = dma.hbm_to_vmem [thread:$0]  (!%p1926_p11), %s2193_s1, 2048, %s208_s7, [#allocation6], %s1829_s12, %s1829_s12, %s1830_s13  }
  0x2a   : > { %p1665_p10 = pnand %p1664_p5, %p1658_p0 }
  0x2c   : > { %1668 = shalt.err (!%p1665_p10)
}
  0x2d   : > { %s1831_s17 = smov 16   ;;  %s1832_s18 = smov 1  }
  0x2e   : > { %1534 = dma.hbm_to_vmem [thread:$0]  (!%p1926_p11), %s2179_s2, 64, %s221_s10, [#allocation6], %s1831_s17, %s1831_s17, %s1832_s18  }
  0x2f   : > { %s1833_s26 = smov [#allocation8]   ;;  %s1949_s7 = sadd.s32 1, %s1825_s24  }
  0x30   : > { %s236_s30 = sshll.u32 %s1833_s26, 4  ;;  %s237_s30 = int_to_ptr.vmem [resolvable:$true] %s236_s30 }
  0x31   : > { %s1680_s9 = scalar_lea.vmem %s237_s30, 64  ;;  %p1688_p3 = scmp.lt.s32.totalorder %s237_s30, %s237_s30 }
  0x32   : > { %p1681_p1 = scmp.ne.s32.totalorder %s237_s30, %s1680_s9  ;;  %p1689_p7 = scmp.lt.s32.totalorder %s1680_s9, %s1680_s9 }
  0x34   : > { %p1683_p2 = pnand %p1681_p1, %p1619_p12  ;;  %p1690_p9 = por %p1689_p7, %p1688_p3 }
  0x36   : > { %p1684_p6 = pneg %p1683_p2 }
  0x38   : > { %p1691_p13 = pnand %p1690_p9, %p1684_p6 }
  0x3a   : > { %1694 = shalt.err (!%p1691_p13)
}
  0x3b   : > { %1537 = dma.hbm_to_vmem [thread:$0]  (!%p1926_p11), %s2181_s4, 64, %s237_s30, [#allocation9], %s1831_s17, %s1831_s17, %s1832_s18  }
  0x3c   : > { %s32_s12 = ssub.s32 %s1825_s24, %s1949_s7  ;;  %s35_s13 = sadd.s32 1, %s1821_s23 }
  0x3d   : > { %p33_p12 = scmp.eq.s32.totalorder %s32_s12, 0  ;;  %p42_p0 = scmp.ne.s32.totalorder %s1821_s23, %s1817_s22 }
  0x3e   : > { %p43_p5 = scmp.eq.s32.totalorder %s1825_s24, 0  ;;  %p1552_p10 = scmp.lt.s32.totalorder %s1825_s24, 2 }
  0x3f   : > { %s1967_s8 = scalar_select %p33_p12, %s1821_s23, %s35_s13  }
  0x40   : > { %p44_p1 = por %p43_p5, %p42_p0  ;;  %p2194_p2 = scmp.eq.s32.totalorder %s1898_s25, 1 }
  0x41   : > { %s250_s15 = sand.u32 1, %s1821_s23   ;;  %s1371_s16 = sshll.u32 %s1825_s24, 7 }
  0x42   : > { %p1971_p6 = por %p2194_p2, %p42_p0  ;;  %s1370_s19 = sshll.u32 %s250_s15, 3 }
  0x43   : > { %s1980_s17 = scalar_lea.hbm %s2177_s0, %s1371_s16  ;;  %s254_s18 = scalar_lea.vmem [#allocation2], %s1370_s19 }
  0x44   : > { %s2195_s14 = scalar_select %p1971_p6, 1, 0 }
  0x45   : > { %s261_s30 = sshll.u32 %s254_s18, 4  ;;  %p1982_p11 = pnand %p1552_p10, %p44_p1  ;;  %s262_s30 = int_to_ptr.vmem [resolvable:$true] %s261_s30 }
  0x46   : > { %s251_s11 = scalar_lea.sflag [#allocation3], %s250_s15  ;;  %s1695_s10 = scalar_lea.hbm %s1980_s17, 128 }
  0x47   : > { %p1696_p3 = scmp.ne.s32.totalorder %s1980_s17, %s1695_s10  ;;  %p1697_p7 = pneg %p1982_p11 }
  0x48   : > { %s1700_s16 = scalar_lea.hbm %s2177_s0, 256  ;;  %p1701_p12 = scmp.lt.s32.totalorder %s1980_s17, %s2177_s0 }
  0x49   : > { %p1698_p9 = pnand %p1697_p7, %p1696_p3  ;;  %p1702_p0 = scmp.lt.s32.totalorder %s1700_s16, %s1695_s10 }
  0x4b   : > { %p1699_p13 = pneg %p1698_p9  ;;  %p1703_p5 = por %p1702_p0, %p1701_p12 }
  0x4d   : > { %p1704_p10 = pnand %p1703_p5, %p1699_p13 }
  0x4f   : > { %1707 = shalt.err (!%p1704_p10)
}
  0x50   : > { %s1708_s26 = scalar_lea.vmem %s262_s30, 128  ;;  %s1834_s15 = smov [#allocation2]  }
  0x51   : > { %p1709_p1 = scmp.ne.s32.totalorder %s262_s30, %s1708_s26  ;;  %s1713_s18 = sshll.u32 %s1834_s15, 4  ;;  %s1714_s18 = int_to_ptr.vmem [resolvable:$false] %s1713_s18 }
  0x52   : > { %s1715_s1 = scalar_lea.vmem %s1714_s18, 256  ;;  %p1716_p3 = scmp.lt.s32.totalorder %s262_s30, %s1714_s18 }
  0x53   : > { %p1711_p2 = pnand %p1709_p1, %p1697_p7  ;;  %p1717_p9 = scmp.lt.s32.totalorder %s1715_s1, %s1708_s26 }
  0x55   : > { %p1712_p6 = pneg %p1711_p2  ;;  %p1718_p4 = por %p1717_p9, %p1716_p3 }
  0x57   : > { %p1719_p8 = pnand %p1718_p4, %p1712_p6 }
  0x59   : > { %1722 = shalt.err (!%p1719_p8)
}
  0x5a   : > { %1541 = dma.hbm_to_vmem [thread:$0]  (!%p1982_p11), %s1980_s17, 128, %s262_s30, %s251_s11  }
  0x5b   : > { %p2197_p13 = scmp.ne.s32.totalorder %s2191_s29, 0 }
  0x5c   : > { %s2003_s10 = sand.u32 (!%p2197_p13), 1, %s1817_s22   ;;  %p2198_p4 = scmp.ne.s32.totalorder (!%p2197_p13), %s2189_s27, 0 }
  0x5d   : > { %270 = sbr.rel (%p2197_p13) target bundleno = 1957 (0x7a5), region = 40  ;;  %s1373_s12 = sshll.u32 (!%p2197_p13), %s2003_s10, 3 }
  0x5e   : > { %s273_s13 = scalar_lea.sflag (!%p2197_p13), [#allocation3], %s2003_s10  ;;  %s2009_s1 = scalar_lea.vmem (!%p2197_p13), [#allocation2], %s1373_s12 }
  0x62   : > { %1792 = dma.done.wait (%p2198_p4), %s273_s13, 128  }
  0x63   : > { %1794 = vsyncadd (%p2198_p4), %s273_s13, 4294967168  ;;  %p2199_p8 = scmp.eq.s32.totalorder %s1898_s25, 0 }
  0x65   : > { %1796 = dma.done.wait (%p2199_p8), [#allocation6], 2112   ;;  %p2200_p6 = pmov %p2199_p8 }
  0x67   : > { %1798 = vsyncadd (%p2200_p6), [#allocation6], 4294965184  ;;  %p2201_p11 = pmov %p2200_p6 }
  0x68   : > { %p2202_p7 = pmov %p2200_p6 }
  0x69   : > { %1800 = dma.done.wait (%p2201_p11), [#allocation9], 64  }
  0x6a   : > { %1802 = vsyncadd (%p2202_p7), [#allocation9], 4294967232  ;;  %v1835_v0 = vmov 0.0   ;;  %vm1836_vm0 = vmmov 0   ;;  %v442_v1 = vld [vmem:[#allocation5 + $0x38] sm:$0xff]  ;;  %v441_v3 = vld [vmem:[#allocation5 + $0x30] sm:$0xff] }
  0x6b   : > { %1454 = vmatprep.subr.mxu1 %v1835_v0  ;;  %1443 = vmatprep.subr.mxu0 %v1835_v0  ;;  %v326_v2 = vld [vmem:[#allocation5 + $0x18] sm:$0xff]  ;;  %v325_v4 = vld [vmem:[#allocation5 + $0x10] sm:$0xff]  ;;  %v440_v5 = vld [vmem:[#allocation5 + $0x28] sm:$0xff]  ;;  %vm334_vm1 = vcmask 261120   ;;  %vm676_vm2 = vcmask 130048   ;;  %s1837_s9 = smov 112  }
  0x6c   : > { %1462 = vmatprep.mubr.msk.f32.mxu1 %vm1836_vm0, %v1835_v0  ;;  %1451 = vmatprep.mubr.msk.f32.mxu0 %vm1836_vm0, %v1835_v0  ;;  %v324_v6 = vld [vmem:[#allocation5 + $0x8] sm:$0xff]  ;;  %v439_v7 = vld [vmem:[#allocation5 + $0x20] sm:$0xff]  ;;  %v322_v9 = vld [vmem:[%s2009_s1] sm:$0xff]  ;;  %vm755_vm4 = vcmask 64512   ;;  %s1378_s20 = sshll.u32 %s2003_s10, 4  ;;  %s1413_s15 = sshll.u32 %s1898_s25, 8 }
  0x6d   : > { %1455 = vmatpush3.msra.mxu1 %v442_v1  ;;  %1444 = vmatpush3.msra.mxu0 %v326_v2  ;;  %v323_v8 = vld [vmem:[#allocation5] sm:$0xff]  ;;  %v556_v20 = vld [vmem:[#allocation5 + $0x58] sm:$0xff]  ;;  %v555_v21 = vld [vmem:[#allocation5 + $0x50] sm:$0xff]  ;;  %v666_v1 = vlaneseq  ;;  %s2081_s19 = scalar_lea.vmem [#allocation11], %s1378_s20  ;;  %s2111_s1 = scalar_lea.hbm %s2183_s6, %s1413_s15 }
  0x6e   : > { %1456 = vmatprep.subr.mxu1 %v1835_v0  ;;  %1445 = vmatprep.subr.mxu0 %v1835_v0  ;;  %v1383_v10 = vld [vmem:[#allocation7 + $0x1] ss:$0 sm:$0xff]  ;;  %v1379_v11 = vld [vmem:[#allocation7] ss:$0 sm:$0xff]  ;;  %v554_v22 = vld [vmem:[#allocation5 + $0x48] sm:$0xff]  ;;  %s1230_s26 = sshll.u32 %s2081_s19, 4  ;;  %s2105_s26 = int_to_ptr.vmem [resolvable:$true] %s1230_s26 }
  0x6f   : > { %1457 = vmatpush3.msra.mxu1 %v441_v3  ;;  %1446 = vmatpush3.msra.mxu0 %v325_v4  ;;  %v553_v23 = vld [vmem:[#allocation5 + $0x40] sm:$0xff]  ;;  %v1386_v43 = vld [vmem:[%s2180_s3 + $0x1] ss:$0 sm:$0xff]  ;;  %v1381_v48 = vld [vmem:[%s2180_s3] ss:$0 sm:$0xff]  ;;  %v667_v2 = vshrl.u32 %v666_v1, 7 }
  0x70   : > { %1458 = vmatprep.subr.mxu1 %v1835_v0  ;;  %1447 = vmatprep.subr.mxu0 %v1835_v0  ;;  %v1387_v45 = vld [vmem:[#allocation8 + $0x1] ss:$0 sm:$0xff]  ;;  %v1382_v51 = vld [vmem:[#allocation8] ss:$0 sm:$0xff]  ;;  %v1388_v54 = vld [vmem:[#allocation7 + $0x2] ss:$0 sm:$0xff] }
  0x71   : > { %1459 = vmatpush3.msra.mxu1 %v440_v5  ;;  %1448 = vmatpush3.msra.mxu0 %v324_v6  ;;  %v669_v3 = vand.u32 127, %v666_v1  ;;  %s1204_s27 = scalar_lea.sflag [#allocation12], %s2003_s10  ;;  %s1723_s29 = scalar_lea.vmem %s2105_s26, 256 }
  0x72   : > { %1460 = vmatprep.subr.mxu1 %v1835_v0  ;;  %1449 = vmatprep.subr.mxu0 %v1835_v0  ;;  %p1724_p12 = scmp.ne.s32.totalorder %s2105_s26, %s1723_s29  ;;  %p2203_p0 = scmp.ne.s32.totalorder %s2195_s14, 0 }
  0x73   : > { %1461 = vmatpush3.msra.mxu1 %v439_v7  ;;  %1450 = vmatpush3.msra.mxu0 %v323_v8  ;;  %vm670_vm3 = vcmp.ge.s32.totalorder %v667_v2, %v669_v3  ;;  %s1838_s17 = smov [#allocation11]  }
  0x74   : > { %1463 = vmatmul.mubr.msk.f32.vlgmr.msra.gmra.mxu1 %vm334_vm1, %v322_v9  ;;  %1452 = vmatmul.mubr.msk.f32.vlgmr.msra.gmra.mxu0 %vm334_vm1, %v322_v9  ;;  %p1725_p5 = pnand %p1724_p12, %p2203_p0  ;;  %s1727_s30 = sshll.u32 %s1838_s17, 4  ;;  %s1728_s30 = int_to_ptr.vmem [resolvable:$false] %s1727_s30 }
  0x75   : > { %1465 = vmatprep.subr.mxu0 %v1835_v0  ;;  %1473 = vmatprep.mubr.msk.f32.mxu0 %vm1836_vm0, %v1835_v0  ;;  %p1730_p1 = scmp.lt.s32.totalorder %s2105_s26, %s1728_s30 }
  0x76   : > { %1476 = vmatprep.subr.mxu1 %v1835_v0  ;;  %1478 = vmatprep.mubr.msk.f32.mxu1 %vm1836_vm0, %v1835_v0  ;;  %p1726_p10 = pneg %p1725_p5 }
  0x77   : > { %1466 = vmatpush3.msra.mxu0 %v556_v20  ;;  %v1391_v20 = vld [vmem:[%s2180_s3 + $0x2] ss:$0 sm:$0xff] }
  0x78   : > { %1467 = vmatprep.subr.mxu0 %v1835_v0 }
  0x79   : > { %1468 = vmatpush3.msra.mxu0 %v555_v21 }
  0x7a   : > { %1469 = vmatprep.subr.mxu0 %v1835_v0 }
  0x7b   : > { %1470 = vmatpush3.msra.mxu0 %v554_v22 }
  0x7c   : > { %1471 = vmatprep.subr.mxu0 %v1835_v0 }
  0x7d   : > { %1472 = vmatpush3.msra.mxu0 %v553_v23  ;;  %v1392_v23 = vld [vmem:[#allocation8 + $0x2] ss:$0 sm:$0xff] }
  0x7e   : > { %1474 = vmatmul.mubr.msk.f32.vlgmr.msra.gmra.mxu0 %vm334_vm1, %v322_v9  ;;  %1486 = vmatprep.subr.mxu0 %v1835_v0 }
  0x7f   : > { %1488 = vmatprep.mubr.msk.f32.mxu0 %vm1836_vm0, %v1835_v0 }
 0x134   : > { %v517_v12 = vpop.f32.mrf.mxu1  ;;  %v404_v13 = vpop.f32.mrf.mxu0 }
 0x135   : > { %v518_v14 = vadd.f32 %v1383_v10, %v517_v12  ;;  %v405_v15 = vadd.f32 %v1379_v11, %v404_v13 }
 0x136   : > { %v1464_v16 = vpop.f32.mrf.mxu1  ;;  %v1453_v17 = vpop.f32.mrf.mxu0 }
 0x137   : > { %v521_v18 = vsel %vm334_vm1, %v518_v14, 0.0  ;;  %v408_v19 = vsel %vm334_vm1, %v405_v15, 0.0 }
 0x138   : > { %522 = vadd.xlane.f32.xlu0 %v521_v18 }
 0x13c   : > { %409 = vadd.xlane.f32.xlu0 %v408_v19 }
 0x13e   : > { %v631_v34 = vpop.f32.mrf.mxu0 }
 0x13f   : > { %v632_v55 = vadd.f32 %v1388_v54, %v631_v34 }
 0x140   : > { %v1475_v35 = vpop.f32.mrf.mxu0 }
 0x141   : > { %v635_v56 = vsel %vm334_vm1, %v632_v55, 0.0 }
 0x1c1   : > { %v523_v24 = vpop.xlane.xlu0 %522 }
 0x1c2   : > { %v524_v25 = vmul.f32 0.03125, %v523_v24 }
 0x1c4   : > { %v525_v26 = vsub.f32 %v518_v14, %v524_v25 }
 0x1c5   : > { %v410_v27 = vpop.xlane.xlu0 %409 }
 0x1c6   : > { %v412_v28 = vmul.f32 0.03125, %v410_v27  ;;  %v526_v29 = vmul.f32 %v525_v26, %v525_v26 }
 0x1c8   : > { %v413_v30 = vsub.f32 %v405_v15, %v412_v28  ;;  %v527_v31 = vsel %vm334_vm1, %v526_v29, 0.0 }
 0x1c9   : > { %528 = vadd.xlane.f32.xlu1 %v527_v31 }
 0x1ca   : > { %v414_v32 = vmul.f32 %v413_v30, %v413_v30 }
 0x1cc   : > { %v415_v33 = vsel %vm334_vm1, %v414_v32, 0.0 }
 0x1cd   : > { %416 = vadd.xlane.f32.xlu1 %v415_v33 }
 0x252   : > { %v529_v36 = vpop.xlane.xlu1 %528 }
 0x253   : > { %v530_v37 = vmul.f32 0.03125, %v529_v36 }
 0x255   : > { %v531_v38 = vadd.f32 1e-05, %v530_v37  ;;  %v675_v37 = vld [vmem:[#allocation5 + $0x78] sm:$0xff] }
 0x256   : > { %v417_v39 = vpop.xlane.xlu1 %416 }
 0x257   : > { %1601 = vrsqrt.f32 %v531_v38  ;;  %v418_v40 = vmul.f32 0.03125, %v417_v39  ;;  %v674_v38 = vld [vmem:[#allocation5 + $0x70] sm:$0xff] }
 0x259   : > { %v419_v41 = vadd.f32 1e-05, %v418_v40 }
 0x25b   : > { %1603 = vrsqrt.f32 %v419_v41 }
 0x264   : > { %v1602_v42 = vpop.eup %1601 }
 0x265   : > { %v533_v44 = vmul.f32 %v1602_v42, %v525_v26  ;;  %v673_v42 = vld [vmem:[#allocation5 + $0x68] sm:$0xff] }
 0x267   : > { %v542_v46 = vmul.f32 %v1386_v43, %v533_v44  ;;  %v672_v43 = vld [vmem:[#allocation5 + $0x60] sm:$0xff] }
 0x268   : > { %v1604_v47 = vpop.eup %1603 }
 0x269   : > { %v551_v49 = vadd.f32 %v1387_v45, %v542_v46  ;;  %v421_v50 = vmul.f32 %v1604_v47, %v413_v30 }
 0x26b   : > { %1477 = vmatpush3.xpose.msk.msra.mxu1 %vm676_vm2, %v551_v49  ;;  %843 = vrot.lane.b32.xlu0 %v551_v49, %s1837_s9  ;;  %v429_v52 = vmul.f32 %v1381_v48, %v421_v50 }
 0x26c   : > { %1481 = vmatprep.subr.mxu1 %v1835_v0 }
 0x26d   : > { %v437_v53 = vadd.f32 %v1382_v51, %v429_v52  ;;  %v1402_v51 = vld [vmem:[#allocation7 + $0x3] ss:$0 sm:$0xff] }
 0x26f   : > { %841 = vrot.lane.b32.xlu1 %v437_v53, %s1837_s9  ;;  %1479 = vmatmul.mubr.msk.f32.vlgmr.msra.gmra.mxu1 %vm676_vm2, %v437_v53 }
 0x270   : > { %1483 = vmatprep.mubr.msk.f32.mxu1 %vm1836_vm0, %v1835_v0 }
 0x293   : > { %636 = vadd.xlane.f32.xlu1 %v635_v56 }
 0x2dd   : > { %v844_v57 = vpop.permute.xlu0 %843 }
 0x2de   : > { %1487 = vmatpush3.xpose.msk.msra.mxu0 %vm676_vm2, %v844_v57 }
 0x2df   : > { %1496 = vmatprep.subr.mxu0 %v1835_v0 }
 0x2e1   : > { %v842_v58 = vpop.permute.xlu1 %841 }
 0x2e2   : > { %1489 = vmatmul.mubr.msk.f32.vlgmr.msra.gmra.mxu0 %vm676_vm2, %v842_v58 }
 0x2e3   : > { %1500 = vmatprep.mubr.msk.f32.mxu0 %vm1836_vm0, %v1835_v0  ;;  %1497 = vmatpush3.msra.mxu0 %v675_v37 }
 0x2e4   : > { %1498 = vmatprep.subr.mxu0 %v1835_v0 }
 0x2e5   : > { %1499 = vmatpush3.msra.mxu0 %v674_v38 }
 0x31c   : > { %v637_v59 = vpop.xlane.xlu1 %636 }
 0x31d   : > { %v638_v60 = vmul.f32 0.03125, %v637_v59 }
 0x31f   : > { %v639_v61 = vsub.f32 %v632_v55, %v638_v60 }
 0x321   : > { %v640_v62 = vmul.f32 %v639_v61, %v639_v61 }
 0x323   : > { %v641_v63 = vsel %vm334_vm1, %v640_v62, 0.0 }
 0x324   : > { %642 = vadd.xlane.f32.xlu1 %v641_v63 }
 0x32f   : > { %v749_v4 = vpop.f32.mrf.mxu1 }
 0x330   : > { %v753_v5 = vmul.f32 0.25, %v749_v4 }
 0x331   : > { %v1480_v6 = vpop.f32.mrf.mxu1 }
 0x332   : > { %v754_v7 = vsel %vm670_vm3, %v753_v5, -1e+30 }
 0x333   : > { %v756_v8 = vsel %vm755_vm4, %v754_v7, -inf }
 0x334   : > { %757 = vmax.xlane.f32.xlu0 %v756_v8 }
 0x3a2   : > { %v915_v9 = vpop.f32.mrf.mxu0 }
 0x3a3   : > { %v919_v10 = vmul.f32 0.25, %v915_v9 }
 0x3a4   : > { %v1490_v11 = vpop.f32.mrf.mxu0 }
 0x3a5   : > { %v920_v12 = vsel %vm670_vm3, %v919_v10, -1e+30 }
 0x3a6   : > { %v921_v13 = vsel %vm755_vm4, %v920_v12, -inf }
 0x3a7   : > { %922 = vmax.xlane.f32.xlu0 %v921_v13 }
 0x3ad   : > { %v643_v14 = vpop.xlane.xlu1 %642 }
 0x3ae   : > { %v644_v15 = vmul.f32 0.03125, %v643_v14 }
 0x3b0   : > { %v645_v16 = vadd.f32 1e-05, %v644_v15 }
 0x3b2   : > { %1605 = vrsqrt.f32 %v645_v16 }
 0x3bd   : > { %v758_v17 = vpop.xlane.xlu0 %757 }
 0x3be   : > { %v759_v18 = vsub.f32 %v754_v7, %v758_v17 }
 0x3bf   : > { %v1606_v19 = vpop.eup %1605 }
 0x3c0   : > { %v760_v21 = vmul.f32 1.442695, %v759_v18  ;;  %v647_v22 = vmul.f32 %v1606_v19, %v639_v61 }
 0x3c2   : > { %1607 = vpow2.f32 %v760_v21  ;;  %v656_v24 = vmul.f32 %v1391_v20, %v647_v22 }
 0x3c4   : > { %v665_v25 = vadd.f32 %v1392_v23, %v656_v24 }
 0x3c6   : > { %1482 = vmatpush3.msra.mxu1 %v665_v25  ;;  %840 = vst.msk [vmem:[%s2081_s19] sm:$0xff] %vm676_vm2, %v665_v25 }
 0x3c7   : > { %1491 = vmatprep.subr.mxu1 %v1835_v0 }
 0x3cf   : > { %v1608_v26 = vpop.eup %1607 }
 0x3d0   : > { %v762_v27 = vsel %vm755_vm4, %v1608_v26, 0.0 }
 0x3d1   : > { %763 = vadd.xlane.f32.xlu0 %v762_v27 }
 0x3e7   : > { %933 = vrot.lane.b32.xlu0 %v665_v25, %s1837_s9  ;;  %s1729_s9 = scalar_lea.vmem %s1728_s30, 512 }
 0x3e8   : > { %p1731_p2 = scmp.lt.s32.totalorder %s1729_s9, %s1723_s29 }
 0x3ea   : > { %p1732_p3 = por %p1731_p2, %p1730_p1 }
 0x3ec   : > { %p1733_p9 = pnand %p1732_p3, %p1726_p10 }
 0x430   : > { %v923_v28 = vpop.xlane.xlu0 %922 }
 0x431   : > { %v924_v29 = vsub.f32 %v920_v12, %v923_v28 }
 0x433   : > { %v925_v30 = vmul.f32 1.442695, %v924_v29 }
 0x435   : > { %1609 = vpow2.f32 %v925_v30 }
 0x442   : > { %v1610_v31 = vpop.eup %1609 }
 0x443   : > { %v927_v32 = vsel %vm755_vm4, %v1610_v31, 0.0 }
 0x444   : > { %928 = vadd.xlane.f32.xlu1 %v927_v32 }
 0x45a   : > { %v764_v33 = vpop.xlane.xlu0 %763 }
 0x45b   : > { %1611 = vrcp.f32 %v764_v33 }
 0x45e   : > { %v934_v34 = vpop.permute.xlu0 %933 }
 0x45f   : > { %1401 = vst.msk [vmem:[%s2081_s19 + $0x8] sm:$0xff] %vm676_vm2, %v934_v34 }
 0x468   : > { %v1612_v35 = vpop.eup %1611 }
 0x469   : > { %v766_v36 = vmul.f32 %v1612_v35, %v1608_v26 }
 0x46b   : > { %1484 = vmatmul.mubr.msk.f32.vlgmr.msra.gmra.mxu1 %vm755_vm4, %v766_v36 }
 0x46c   : > { %1492 = vmatpush3.msra.mxu1 %v934_v34  ;;  %1493 = vmatprep.mubr.msk.f32.mxu1 %vm1836_vm0, %v1835_v0 }
 0x46d   : > { %1503 = vmatprep.subr.mxu1 %v1835_v0 }
 0x4cd   : > { %v929_v39 = vpop.xlane.xlu1 %928 }
 0x4ce   : > { %1613 = vrcp.f32 %v929_v39 }
 0x4db   : > { %v1614_v40 = vpop.eup %1613 }
 0x4dc   : > { %v931_v41 = vmul.f32 %v1614_v40, %v1610_v31 }
 0x4de   : > { %1494 = vmatmul.mubr.msk.f32.vlgmr.msra.gmra.mxu1 %vm755_vm4, %v931_v41 }
 0x4df   : > { %1504 = vmatpush3.msra.mxu1 %v673_v42  ;;  %1507 = vmatprep.mubr.msk.f32.mxu1 %vm1836_vm0, %v1835_v0 }
 0x4e0   : > { %1505 = vmatprep.subr.mxu1 %v1835_v0 }
 0x4e1   : > { %1506 = vmatpush3.msra.mxu1 %v672_v43 }
 0x52b   : > { %v836_v44 = vpop.f32.mrf.mxu1 }
 0x52c   : > { %1508 = vmatmul.mubr.msk.f32.vlgmr.msra.gmra.mxu1 %vm676_vm2, %v836_v44 }
 0x52d   : > { %v1485_v45 = vpop.f32.mrf.mxu1 }
 0x59e   : > { %v1005_v46 = vpop.f32.mrf.mxu1 }
 0x59f   : > { %1501 = vmatmul.mubr.msk.f32.vlgmr.msra.gmra.mxu0 %vm676_vm2, %v1005_v46 }
 0x5a0   : > { %v1495_v47 = vpop.f32.mrf.mxu1 }
 0x5ec   : > { %v1151_v48 = vpop.f32.mrf.mxu1 }
 0x5ee   : > { %v1509_v49 = vpop.f32.mrf.mxu1 }
 0x65f   : > { %v1078_v50 = vpop.f32.mrf.mxu0 }
 0x660   : > { %v1152_v52 = vadd.f32 %v1151_v48, %v1078_v50 }
 0x661   : > { %v1502_v53 = vpop.f32.mrf.mxu0 }
 0x662   : > { %v1165_v54 = vadd.f32 %v1402_v51, %v1152_v52 }
 0x664   : > { %v1166_v0 = vsel %vm334_vm1, %v1165_v54, 0.0 }
 0x665   : > { %1167 = vadd.xlane.f32.xlu1 %v1166_v0 }
 0x6ee   : > { %v1168_v55 = vpop.xlane.xlu1 %1167 }
 0x6ef   : > { %v1169_v56 = vmul.f32 0.03125, %v1168_v55 }
 0x6f1   : > { %v1170_v57 = vsub.f32 %v1165_v54, %v1169_v56 }
 0x6f3   : > { %v1171_v58 = vmul.f32 %v1170_v57, %v1170_v57 }
 0x6f5   : > { %v1172_v59 = vsel %vm334_vm1, %v1171_v58, 0.0 }
 0x6f6   : > { %1173 = vadd.xlane.f32.xlu1 %v1172_v59 }
 0x6f7   : > { %1736 = shalt.err (!%p1733_p9)
}
 0x6f8   : > { %s1737_s11 = scalar_lea.hbm %s2111_s1, 256  ;;  %s1741_s19 = scalar_lea.hbm %s2183_s6, 512 }
 0x6f9   : > { %p1738_p13 = scmp.ne.s32.totalorder %s2111_s1, %s1737_s11  ;;  %p1742_p6 = scmp.lt.s32.totalorder %s2111_s1, %s2183_s6 }
 0x6fa   : > { %p1743_p11 = scmp.lt.s32.totalorder %s1741_s19, %s1737_s11 }
 0x6fb   : > { %p1739_p4 = pnand %p1738_p13, %p2203_p0 }
 0x6fc   : > { %p1744_p7 = por %p1743_p11, %p1742_p6 }
 0x6fd   : > { %p1740_p8 = pneg %p1739_p4 }
 0x6ff   : > { %p1745_p12 = pnand %p1744_p7, %p1740_p8 }
 0x701   : > { %1748 = shalt.err (!%p1745_p12)
}
 0x702   : > { %s1839_s13 = smov 128   ;;  %s1840_s29 = smov 8   ;;  %v1404_v1 = vld [vmem:[%s2180_s3 + $0x3] ss:$0 sm:$0xff]  ;;  %v1405_v3 = vld [vmem:[#allocation8 + $0x3] ss:$0 sm:$0xff] }
 0x703   : > { %1525 = dma.vmem_to_hbm [thread:$0]  (%p2203_p0), %s2105_s26, 256, %s2111_s1, %s1204_s27, %s1839_s13, %s1839_s13, %s1840_s29  }
 0x704   : > { %s1408_s9 = sshll.u32 %s1898_s25, 7  ;;  %s314_s11 = scalar_lea.vmem [#allocation10], %s1373_s12 }
 0x705   : > { %s1217_s16 = sshll.u32 %s314_s11, 4  ;;  %s1215_s27 = scalar_lea.hbm %s2182_s5, %s1408_s9  ;;  %s1218_s16 = int_to_ptr.vmem [resolvable:$true] %s1217_s16 }
 0x706   : > { %s1199_s20 = scalar_lea.sflag [#allocation4], %s2003_s10  ;;  %s1749_s19 = scalar_lea.vmem %s1218_s16, 128 }
 0x707   : > { %p1750_p5 = scmp.ne.s32.totalorder %s1218_s16, %s1749_s19  ;;  %s1841_s15 = smov [#allocation10]  }
 0x708   : > { %s1753_s25 = sshll.u32 %s1841_s15, 4  ;;  %s1754_s25 = int_to_ptr.vmem [resolvable:$false] %s1753_s25 }
 0x709   : > { %p1751_p10 = pnand %p1750_p5, %p2203_p0  ;;  %s1755_s12 = scalar_lea.vmem %s1754_s25, 256 }
 0x70a   : > { %p1756_p2 = scmp.lt.s32.totalorder %s1218_s16, %s1754_s25  ;;  %p1757_p3 = scmp.lt.s32.totalorder %s1755_s12, %s1749_s19 }
 0x70b   : > { %p1752_p1 = pneg %p1751_p10 }
 0x70c   : > { %p1758_p9 = por %p1757_p3, %p1756_p2 }
 0x70e   : > { %p1759_p13 = pnand %p1758_p9, %p1752_p1 }
 0x77f   : > { %v1174_v60 = vpop.xlane.xlu1 %1173 }
 0x780   : > { %v1175_v61 = vmul.f32 0.03125, %v1174_v60 }
 0x782   : > { %v1176_v62 = vadd.f32 1e-05, %v1175_v61 }
 0x784   : > { %1615 = vrsqrt.f32 %v1176_v62 }
 0x791   : > { %v1616_v63 = vpop.eup %1615 }
 0x792   : > { %v1178_v2 = vmul.f32 %v1616_v63, %v1170_v57 }
 0x794   : > { %v1187_v4 = vmul.f32 %v1404_v1, %v1178_v2 }
 0x796   : > { %v1196_v5 = vadd.f32 %v1405_v3, %v1187_v4 }
 0x798   : > { %1197 = vst.msk [vmem:[%s314_s11] sm:$0xff] %vm334_vm1, %v1196_v5 }
 0x799   : > { %1762 = shalt.err (!%p1759_p13)
}
 0x79a   : > { %s1763_s18 = scalar_lea.hbm %s1215_s27, 128  ;;  %s1767_s29 = scalar_lea.hbm %s2182_s5, 256 }
 0x79b   : > { %p1764_p4 = scmp.ne.s32.totalorder %s1215_s27, %s1763_s18  ;;  %p1768_p11 = scmp.lt.s32.totalorder %s1215_s27, %s2182_s5 }
 0x79c   : > { %p1769_p7 = scmp.lt.s32.totalorder %s1767_s29, %s1763_s18 }
 0x79d   : > { %p1765_p8 = pnand %p1764_p4, %p2203_p0 }
 0x79e   : > { %p1770_p12 = por %p1769_p7, %p1768_p11 }
 0x79f   : > { %p1766_p6 = pneg %p1765_p8 }
 0x7a1   : > { %p1771_p5 = pnand %p1770_p12, %p1766_p6 }
 0x7a3   : > { %1774 = shalt.err (!%p1771_p5)
}
 0x7a4   : > { %1524 = dma.vmem_to_hbm [thread:$0]  (%p2203_p0), %s1218_s16, 128, %s1215_s27, %s1199_s20  }
 0x7a5 PF: > { %s1245_s9 = sand.u32 1, %s1813_s21   ;;  %p2204_p10 = scmp.ne.s32.totalorder %s2190_s28, 0 }
 0x7a6   : > { %p2205_p1 = scmp.ge.s32.totalorder %s1825_s24, 2  ;;  %s1246_s11 = scalar_lea.sflag [#allocation4], %s1245_s9 }
 0x7a8   : > { %p1543_p2 = pnand %p2205_p1, %p2204_p10 }
 0x7aa   : > { %p1544_p3 = pneg %p1543_p2 }
 0x7ac   : > { %1804 = dma.done.wait (%p1544_p3), %s1246_s11, 128  }
 0x7ad   : > { %1806 = vsyncadd (%p1544_p3), %s1246_s11, 4294967168  ;;  %s1255_s26 = scalar_lea.sflag [#allocation12], %s1245_s9 }
 0x7ae   : > { %1808 = dma.done.wait (%p1544_p3), %s1255_s26, 256  }
 0x7af   : > { %1810 = vsyncadd (%p1544_p3), %s1255_s26, 4294967040  ;;  %p25_p0 = scmp.ge.s32.totalorder %s1949_s7, 4   ;;  %s2206_s21 = smov %s1817_s22 }
 0x7b0   : > { %s2207_s22 = smov %s1821_s23  ;;  %s2208_s23 = smov %s1967_s8 }
 0x7b1   : > { %s2209_s24 = smov %s1949_s7  ;;  %27 = sbr.rel (!%p25_p0) target bundleno = 11 (0xb), region = 127 }
 0x7b6   :  { %1260 = vsyncpa [#allocation3], 1 }
 0x7b7   :  { %1262 = vsyncpa [#allocation3 + $0x1], 1 }
 0x7b8   :  { %1263 = vsyncpa [#allocation6], 1 }
 0x7b9   :  { %1264 = vsyncpa [#allocation9], 1 }
 0x7ba   :  { %1265 = vsyncpa [#allocation4], 1 }
 0x7bb   :  { %1267 = vsyncpa [#allocation4 + $0x1], 1 }
 0x7bc   :  { %1268 = vsyncpa [#allocation12], 1 }
 0x7bd   :  { %1270 = vsyncpa [#allocation12 + $0x1], 1 }

</bundles_post_ra>
